<compile_context>
chip_gen: v6e
topology: v6e:2x2x1
jax: 0.10.0
libtpu: 0.0.40
codegen_flags: <defaults>
</compile_context>

<pallas_src>
import jax
import jax.numpy as jnp
from jax.experimental import pallas as pl
from jax.experimental.pallas import tpu as pltpu


def _round_up(x, m):
    return ((x + m - 1) // m) * m


def _mish(z):
    # mish(z) = z * tanh(softplus(z)).  With e = exp(z):
    #   tanh(softplus(z)) = ((1+e)^2 - 1) / ((1+e)^2 + 1) = e*(e+2) / (e*(e+2) + 2)
    # -> one exp + one approx reciprocal (both EUP) instead of exp+log1p+tanh.
    e = jnp.exp(jnp.minimum(z, 20.0))     # clamp: for z > 20 the ratio is 1.0 in f32
    t = e * (e + 2.0)
    return z * t * pl.reciprocal(t + 2.0, approx=True)


def _vnet_kernel(x_ref, w0_ref, b0_ref, wp_ref, bp_ref, o_ref):
    # Layer 0: (tile_b, state_dim) @ (state_dim, H); accumulate in f32.
    h = x_ref[...].astype(jnp.float32)
    z = jnp.dot(h.astype(w0_ref.dtype), w0_ref[...],
                preferred_element_type=jnp.float32) + b0_ref[...]
    h = _mish(z)

    n_pack = wp_ref.shape[0]
    # Hidden layers (mish), fully unrolled; packed weights are VMEM-resident.
    for i in range(n_pack - 1):
        z = jnp.dot(h.astype(wp_ref.dtype), wp_ref[i],
                    preferred_element_type=jnp.float32) + bp_ref[i]
        h = _mish(z)

    # Final linear layer (its output dim is zero-padded to H inside the pack).
    out = jnp.dot(h.astype(wp_ref.dtype), wp_ref[n_pack - 1],
                  preferred_element_type=jnp.float32) + bp_ref[n_pack - 1]
    o_ref[...] = out[:, : o_ref.shape[1]].astype(o_ref.dtype)


def _pack_params(params, matmul_dtype=None):
    """Layer 0 stays separate (arbitrary state_dim); layers 1..L-1 are packed into
    padded (L-1, H, H) / (L-1, 1, H) buffers."""
    w0, b0 = params[0]
    H = w0.shape[1]
    n_pack = len(params) - 1
    w_pack = jnp.zeros((n_pack, H, H), jnp.float32)
    b_pack = jnp.zeros((n_pack, 1, H), jnp.float32)
    for i, (w, b) in enumerate(params[1:]):
        assert w.shape[0] == H and w.shape[1] <= H, "packing assumes equal hidden widths"
        w_pack = w_pack.at[i, :, : w.shape[1]].set(w)
        b_pack = b_pack.at[i, :, : b.shape[1]].set(b)
    if matmul_dtype is not None:                      # e.g. jnp.bfloat16 on v6e/v7x
        w0 = w0.astype(matmul_dtype)
        w_pack = w_pack.astype(matmul_dtype)
    return w0, b0, w_pack, b_pack


def vnetwork_forward(s, params, *, max_tile_b=256, matmul_dtype=None):
    """params: list of (W:(in,out), b:(1,out)) for the 6 linear layers.
    matmul_dtype: optionally jnp.bfloat16 for the dot operands on v6e/v7x
    (accumulation and all elementwise math remain f32)."""
    B, state_dim = s.shape
    H = params[0][0].shape[1]
    out_dim = params[-1][0].shape[1]
    n_layers = len(params)

    w0, b0, w_pack, b_pack = _pack_params(params, matmul_dtype)

    # Batch tiling: either the whole (8-padded) batch in one grid step, or
    # 256-row tiles with >=2 parallel steps on large batches (feeds both v7x TCs).
    b_pad8 = _round_up(B, 8)
    tile_b = b_pad8 if b_pad8 <= max_tile_b else max_tile_b
    b_padded = _round_up(B, tile_b)
    if b_padded != B:
        s = jnp.pad(s, ((0, b_padded - B), (0, 0)))   # padded rows are MXU filler
    grid = (b_padded // tile_b,)

    flops = 2 * b_padded * (state_dim * H + (n_layers - 1) * H * H)
    transcendentals = 2 * (n_layers - 1) * b_padded * H   # one exp + one recip per mish elem
    bytes_accessed = (s.size * s.dtype.itemsize
                      + w0.size * w0.dtype.itemsize + b0.size * 4
                      + w_pack.size * w_pack.dtype.itemsize + b_pack.size * 4
                      + b_padded * out_dim * 4)

    out = pl.pallas_call(
        _vnet_kernel,
        out_shape=jax.ShapeDtypeStruct((b_padded, out_dim), s.dtype),
        grid=grid,
        in_specs=[
            pl.BlockSpec((tile_b, state_dim), lambda i: (i, 0)),
            pl.BlockSpec(w0.shape, lambda i: (0, 0)),
            pl.BlockSpec(b0.shape, lambda i: (0, 0)),
            pl.BlockSpec(w_pack.shape, lambda i: (0, 0, 0)),
            pl.BlockSpec(b_pack.shape, lambda i: (0, 0, 0)),
        ],
        out_specs=pl.BlockSpec((tile_b, out_dim), lambda i: (i, 0)),
        compiler_params=pltpu.CompilerParams(
            dimension_semantics=("parallel",)),
        cost_estimate=pl.CostEstimate(
            flops=flops,
            transcendentals=transcendentals,
            bytes_accessed=bytes_accessed),
    )(s, w0, b0, w_pack, b_pack)

    return out[:B, 0]   # matches torch .squeeze(-1): (B,)


def init_vnetwork_params(key, state_dim, hidden_sizes=(64, 64, 64, 64, 64)):
    dims = [state_dim] + list(hidden_sizes) + [1]
    params = []
    for i in range(len(dims) - 1):
        key, kw, kb = jax.random.split(key, 3)
        fan_in = dims[i]
        bound = 1.0 / jnp.sqrt(fan_in)
        w = jax.random.uniform(kw, (dims[i], dims[i + 1]),
                               minval=-bound, maxval=bound, dtype=jnp.float32)
        b = jax.random.uniform(kb, (1, dims[i + 1]),
                               minval=-bound, maxval=bound, dtype=jnp.float32)
        params.append((w, b))
    return params


if __name__ == "__main__":
    key = jax.random.PRNGKey(0)
    k_s, k_p = jax.random.split(key)

    B, state_dim = 16, 8
    s = jax.random.normal(k_s, (B, state_dim), dtype=jnp.float32)
    params = init_vnetwork_params(k_p, state_dim)

    v = vnetwork_forward(s, params)
    jax.block_until_ready(v)

    # Pure-JAX reference for sanity.
    def ref(x):
        h = x
        for (w, b) in params[:-1]:
            z = h @ w + b
            h = z * jnp.tanh(jax.nn.softplus(z))
        w, b = params[-1]
        return (h @ w + b).squeeze(-1)

    ref_v = ref(s)
    assert v.shape == (B,)
    assert jnp.allclose(v, ref_v, atol=2e-3, rtol=2e-3), (
        f"max abs err {jnp.max(jnp.abs(v - ref_v))}")

    # Ragged batch exercises the padding / masked-tail path.
    B2 = 13
    s2 = jax.random.normal(jax.random.PRNGKey(1), (B2, state_dim), dtype=jnp.float32)
    v2 = vnetwork_forward(s2, params)
    jax.block_until_ready(v2)
    assert v2.shape == (B2,)
    assert jnp.allclose(v2, ref(s2), atol=2e-3, rtol=2e-3)

    print("KERNEL_OK")
</pallas_src>

<mosaic_0001>
module attributes {stable_mosaic.version = 11 : i64} {
  func.func @_vnet_kernel(%arg0: i32, %arg1: memref<16x8xf32, #tpu.memory_space<vmem>>, %arg2: memref<8x64xf32, #tpu.memory_space<vmem>>, %arg3: memref<1x64xf32, #tpu.memory_space<vmem>>, %arg4: memref<5x64x64xf32, #tpu.memory_space<vmem>>, %arg5: memref<5x1x64xf32, #tpu.memory_space<vmem>>, %arg6: memref<16x1xf32, #tpu.memory_space<vmem>>) attributes {dimension_semantics = [#tpu.dimension_semantics<parallel>], iteration_bounds = array<i64: 1>, scalar_prefetch = 0 : i64, scratch_operands = 0 : i64, tpu.core_type = #tpu.core_type<tc>, window_params = [{transform_indices = @transform_0, window_bounds = array<i64: 16, 8>}, {pipeline_mode = #tpu.pipeline_mode<synchronous>, transform_indices = @transform_1, window_bounds = array<i64: 8, 64>}, {pipeline_mode = #tpu.pipeline_mode<synchronous>, transform_indices = @transform_2, window_bounds = array<i64: 1, 64>}, {pipeline_mode = #tpu.pipeline_mode<synchronous>, transform_indices = @transform_3, window_bounds = array<i64: 5, 64, 64>}, {pipeline_mode = #tpu.pipeline_mode<synchronous>, transform_indices = @transform_4, window_bounds = array<i64: 5, 1, 64>}, {transform_indices = @transform_5, window_bounds = array<i64: 16, 1>}]} {
    %c0 = arith.constant 0 : index
    %c0_0 = arith.constant 0 : index
    %0 = vector.load %arg1[%c0, %c0_0] : memref<16x8xf32, #tpu.memory_space<vmem>>, vector<16x8xf32>
    %c0_1 = arith.constant 0 : index
    %c0_2 = arith.constant 0 : index
    %1 = vector.load %arg2[%c0_1, %c0_2] : memref<8x64xf32, #tpu.memory_space<vmem>>, vector<8x64xf32>
    %cst = arith.constant dense<0.000000e+00> : vector<16x64xf32>
    %2 = tpu.matmul %0, %1, %cst {dimension_numbers = #tpu.dot_dimension_numbers<[1], [0], [0], [1], [0, 0, 1, 1], [], []>} : vector<16x8xf32>, vector<8x64xf32>, vector<16x64xf32> -> vector<16x64xf32>
    %c0_3 = arith.constant 0 : index
    %c0_4 = arith.constant 0 : index
    %3 = vector.load %arg3[%c0_3, %c0_4] : memref<1x64xf32, #tpu.memory_space<vmem>>, vector<1x64xf32>
    %4 = vector.broadcast %3 : vector<1x64xf32> to vector<16x64xf32>
    %5 = arith.addf %2, %4 : vector<16x64xf32>
    %cst_5 = arith.constant 2.000000e+01 : f32
    %6 = vector.broadcast %cst_5 : f32 to vector<16x64xf32>
    %7 = arith.minimumf %5, %6 : vector<16x64xf32>
    %8 = math.exp %7 : vector<16x64xf32>
    %cst_6 = arith.constant 2.000000e+00 : f32
    %9 = vector.broadcast %cst_6 : f32 to vector<16x64xf32>
    %10 = arith.addf %8, %9 : vector<16x64xf32>
    %11 = arith.mulf %8, %10 : vector<16x64xf32>
    %12 = arith.mulf %5, %11 : vector<16x64xf32>
    %cst_7 = arith.constant 2.000000e+00 : f32
    %13 = vector.broadcast %cst_7 : f32 to vector<16x64xf32>
    %14 = arith.addf %11, %13 : vector<16x64xf32>
    %15 = tpu.reciprocal %14 {approx = true} : vector<16x64xf32> -> vector<16x64xf32>
    %16 = arith.mulf %12, %15 : vector<16x64xf32>
    %c0_8 = arith.constant 0 : index
    %c0_9 = arith.constant 0 : index
    %c0_10 = arith.constant 0 : index
    %17 = vector.load %arg4[%c0_8, %c0_9, %c0_10] : memref<5x64x64xf32, #tpu.memory_space<vmem>>, vector<1x64x64xf32>
    %18 = vector.shape_cast %17 : vector<1x64x64xf32> to vector<64x64xf32>
    %cst_11 = arith.constant dense<0.000000e+00> : vector<16x64xf32>
    %19 = tpu.matmul %16, %18, %cst_11 {dimension_numbers = #tpu.dot_dimension_numbers<[1], [0], [0], [1], [0, 0, 1, 1], [], []>} : vector<16x64xf32>, vector<64x64xf32>, vector<16x64xf32> -> vector<16x64xf32>
    %c0_12 = arith.constant 0 : index
    %c0_13 = arith.constant 0 : index
    %c0_14 = arith.constant 0 : index
    %20 = vector.load %arg5[%c0_12, %c0_13, %c0_14] : memref<5x1x64xf32, #tpu.memory_space<vmem>>, vector<1x1x64xf32>
    %21 = vector.shape_cast %20 : vector<1x1x64xf32> to vector<1x64xf32>
    %22 = vector.broadcast %21 : vector<1x64xf32> to vector<16x64xf32>
    %23 = arith.addf %19, %22 : vector<16x64xf32>
    %cst_15 = arith.constant 2.000000e+01 : f32
    %24 = vector.broadcast %cst_15 : f32 to vector<16x64xf32>
    %25 = arith.minimumf %23, %24 : vector<16x64xf32>
    %26 = math.exp %25 : vector<16x64xf32>
    %cst_16 = arith.constant 2.000000e+00 : f32
    %27 = vector.broadcast %cst_16 : f32 to vector<16x64xf32>
    %28 = arith.addf %26, %27 : vector<16x64xf32>
    %29 = arith.mulf %26, %28 : vector<16x64xf32>
    %30 = arith.mulf %23, %29 : vector<16x64xf32>
    %cst_17 = arith.constant 2.000000e+00 : f32
    %31 = vector.broadcast %cst_17 : f32 to vector<16x64xf32>
    %32 = arith.addf %29, %31 : vector<16x64xf32>
    %33 = tpu.reciprocal %32 {approx = true} : vector<16x64xf32> -> vector<16x64xf32>
    %34 = arith.mulf %30, %33 : vector<16x64xf32>
    %c1 = arith.constant 1 : index
    %c0_18 = arith.constant 0 : index
    %c0_19 = arith.constant 0 : index
    %35 = vector.load %arg4[%c1, %c0_18, %c0_19] : memref<5x64x64xf32, #tpu.memory_space<vmem>>, vector<1x64x64xf32>
    %36 = vector.shape_cast %35 : vector<1x64x64xf32> to vector<64x64xf32>
    %cst_20 = arith.constant dense<0.000000e+00> : vector<16x64xf32>
    %37 = tpu.matmul %34, %36, %cst_20 {dimension_numbers = #tpu.dot_dimension_numbers<[1], [0], [0], [1], [0, 0, 1, 1], [], []>} : vector<16x64xf32>, vector<64x64xf32>, vector<16x64xf32> -> vector<16x64xf32>
    %c1_21 = arith.constant 1 : index
    %c0_22 = arith.constant 0 : index
    %c0_23 = arith.constant 0 : index
    %38 = vector.load %arg5[%c1_21, %c0_22, %c0_23] : memref<5x1x64xf32, #tpu.memory_space<vmem>>, vector<1x1x64xf32>
    %39 = vector.shape_cast %38 : vector<1x1x64xf32> to vector<1x64xf32>
    %40 = vector.broadcast %39 : vector<1x64xf32> to vector<16x64xf32>
    %41 = arith.addf %37, %40 : vector<16x64xf32>
    %cst_24 = arith.constant 2.000000e+01 : f32
    %42 = vector.broadcast %cst_24 : f32 to vector<16x64xf32>
    %43 = arith.minimumf %41, %42 : vector<16x64xf32>
    %44 = math.exp %43 : vector<16x64xf32>
    %cst_25 = arith.constant 2.000000e+00 : f32
    %45 = vector.broadcast %cst_25 : f32 to vector<16x64xf32>
    %46 = arith.addf %44, %45 : vector<16x64xf32>
    %47 = arith.mulf %44, %46 : vector<16x64xf32>
    %48 = arith.mulf %41, %47 : vector<16x64xf32>
    %cst_26 = arith.constant 2.000000e+00 : f32
    %49 = vector.broadcast %cst_26 : f32 to vector<16x64xf32>
    %50 = arith.addf %47, %49 : vector<16x64xf32>
    %51 = tpu.reciprocal %50 {approx = true} : vector<16x64xf32> -> vector<16x64xf32>
    %52 = arith.mulf %48, %51 : vector<16x64xf32>
    %c2 = arith.constant 2 : index
    %c0_27 = arith.constant 0 : index
    %c0_28 = arith.constant 0 : index
    %53 = vector.load %arg4[%c2, %c0_27, %c0_28] : memref<5x64x64xf32, #tpu.memory_space<vmem>>, vector<1x64x64xf32>
    %54 = vector.shape_cast %53 : vector<1x64x64xf32> to vector<64x64xf32>
    %cst_29 = arith.constant dense<0.000000e+00> : vector<16x64xf32>
    %55 = tpu.matmul %52, %54, %cst_29 {dimension_numbers = #tpu.dot_dimension_numbers<[1], [0], [0], [1], [0, 0, 1, 1], [], []>} : vector<16x64xf32>, vector<64x64xf32>, vector<16x64xf32> -> vector<16x64xf32>
    %c2_30 = arith.constant 2 : index
    %c0_31 = arith.constant 0 : index
    %c0_32 = arith.constant 0 : index
    %56 = vector.load %arg5[%c2_30, %c0_31, %c0_32] : memref<5x1x64xf32, #tpu.memory_space<vmem>>, vector<1x1x64xf32>
    %57 = vector.shape_cast %56 : vector<1x1x64xf32> to vector<1x64xf32>
    %58 = vector.broadcast %57 : vector<1x64xf32> to vector<16x64xf32>
    %59 = arith.addf %55, %58 : vector<16x64xf32>
    %cst_33 = arith.constant 2.000000e+01 : f32
    %60 = vector.broadcast %cst_33 : f32 to vector<16x64xf32>
    %61 = arith.minimumf %59, %60 : vector<16x64xf32>
    %62 = math.exp %61 : vector<16x64xf32>
    %cst_34 = arith.constant 2.000000e+00 : f32
    %63 = vector.broadcast %cst_34 : f32 to vector<16x64xf32>
    %64 = arith.addf %62, %63 : vector<16x64xf32>
    %65 = arith.mulf %62, %64 : vector<16x64xf32>
    %66 = arith.mulf %59, %65 : vector<16x64xf32>
    %cst_35 = arith.constant 2.000000e+00 : f32
    %67 = vector.broadcast %cst_35 : f32 to vector<16x64xf32>
    %68 = arith.addf %65, %67 : vector<16x64xf32>
    %69 = tpu.reciprocal %68 {approx = true} : vector<16x64xf32> -> vector<16x64xf32>
    %70 = arith.mulf %66, %69 : vector<16x64xf32>
    %c3 = arith.constant 3 : index
    %c0_36 = arith.constant 0 : index
    %c0_37 = arith.constant 0 : index
    %71 = vector.load %arg4[%c3, %c0_36, %c0_37] : memref<5x64x64xf32, #tpu.memory_space<vmem>>, vector<1x64x64xf32>
    %72 = vector.shape_cast %71 : vector<1x64x64xf32> to vector<64x64xf32>
    %cst_38 = arith.constant dense<0.000000e+00> : vector<16x64xf32>
    %73 = tpu.matmul %70, %72, %cst_38 {dimension_numbers = #tpu.dot_dimension_numbers<[1], [0], [0], [1], [0, 0, 1, 1], [], []>} : vector<16x64xf32>, vector<64x64xf32>, vector<16x64xf32> -> vector<16x64xf32>
    %c3_39 = arith.constant 3 : index
    %c0_40 = arith.constant 0 : index
    %c0_41 = arith.constant 0 : index
    %74 = vector.load %arg5[%c3_39, %c0_40, %c0_41] : memref<5x1x64xf32, #tpu.memory_space<vmem>>, vector<1x1x64xf32>
    %75 = vector.shape_cast %74 : vector<1x1x64xf32> to vector<1x64xf32>
    %76 = vector.broadcast %75 : vector<1x64xf32> to vector<16x64xf32>
    %77 = arith.addf %73, %76 : vector<16x64xf32>
    %cst_42 = arith.constant 2.000000e+01 : f32
    %78 = vector.broadcast %cst_42 : f32 to vector<16x64xf32>
    %79 = arith.minimumf %77, %78 : vector<16x64xf32>
    %80 = math.exp %79 : vector<16x64xf32>
    %cst_43 = arith.constant 2.000000e+00 : f32
    %81 = vector.broadcast %cst_43 : f32 to vector<16x64xf32>
    %82 = arith.addf %80, %81 : vector<16x64xf32>
    %83 = arith.mulf %80, %82 : vector<16x64xf32>
    %84 = arith.mulf %77, %83 : vector<16x64xf32>
    %cst_44 = arith.constant 2.000000e+00 : f32
    %85 = vector.broadcast %cst_44 : f32 to vector<16x64xf32>
    %86 = arith.addf %83, %85 : vector<16x64xf32>
    %87 = tpu.reciprocal %86 {approx = true} : vector<16x64xf32> -> vector<16x64xf32>
    %88 = arith.mulf %84, %87 : vector<16x64xf32>
    %c4 = arith.constant 4 : index
    %c0_45 = arith.constant 0 : index
    %c0_46 = arith.constant 0 : index
    %89 = vector.load %arg4[%c4, %c0_45, %c0_46] : memref<5x64x64xf32, #tpu.memory_space<vmem>>, vector<1x64x64xf32>
    %90 = vector.shape_cast %89 : vector<1x64x64xf32> to vector<64x64xf32>
    %cst_47 = arith.constant dense<0.000000e+00> : vector<16x64xf32>
    %91 = tpu.matmul %88, %90, %cst_47 {dimension_numbers = #tpu.dot_dimension_numbers<[1], [0], [0], [1], [0, 0, 1, 1], [], []>} : vector<16x64xf32>, vector<64x64xf32>, vector<16x64xf32> -> vector<16x64xf32>
    %c4_48 = arith.constant 4 : index
    %c0_49 = arith.constant 0 : index
    %c0_50 = arith.constant 0 : index
    %92 = vector.load %arg5[%c4_48, %c0_49, %c0_50] : memref<5x1x64xf32, #tpu.memory_space<vmem>>, vector<1x1x64xf32>
    %93 = vector.shape_cast %92 : vector<1x1x64xf32> to vector<1x64xf32>
    %94 = vector.broadcast %93 : vector<1x64xf32> to vector<16x64xf32>
    %95 = arith.addf %91, %94 : vector<16x64xf32>
    %96 = vector.extract_strided_slice %95 {offsets = [0, 0], sizes = [16, 1], strides = [1, 1]} : vector<16x64xf32> to vector<16x1xf32>
    %c0_51 = arith.constant 0 : index
    %c0_52 = arith.constant 0 : index
    %97 = vector.load %arg6[%c0_51, %c0_52] : memref<16x1xf32, #tpu.memory_space<vmem>>, vector<16x1xf32>
    tpu.vector_store %arg6[%c0_51, %c0_52], %96 {strides = array<i32>} : memref<16x1xf32, #tpu.memory_space<vmem>>, vector<16x1xf32>,
    return
  }
  func.func @transform_0(%arg0: i32) -> (i32, i32) {
    %c0_i32 = arith.constant 0 : i32
    %c0_i32_0 = arith.constant 0 : i32
    return %arg0, %c0_i32 : i32, i32
  }
  func.func @transform_1(%arg0: i32) -> (i32, i32) {
    %c0_i32 = arith.constant 0 : i32
    %c0_i32_0 = arith.constant 0 : i32
    %c0_i32_1 = arith.constant 0 : i32
    return %c0_i32, %c0_i32_0 : i32, i32
  }
  func.func @transform_2(%arg0: i32) -> (i32, i32) {
    %c0_i32 = arith.constant 0 : i32
    %c0_i32_0 = arith.constant 0 : i32
    %c0_i32_1 = arith.constant 0 : i32
    return %c0_i32, %c0_i32_0 : i32, i32
  }
  func.func @transform_3(%arg0: i32) -> (i32, i32, i32) {
    %c0_i32 = arith.constant 0 : i32
    %c0_i32_0 = arith.constant 0 : i32
    %c0_i32_1 = arith.constant 0 : i32
    %c0_i32_2 = arith.constant 0 : i32
    return %c0_i32, %c0_i32_0, %c0_i32_1 : i32, i32, i32
  }
  func.func @transform_4(%arg0: i32) -> (i32, i32, i32) {
    %c0_i32 = arith.constant 0 : i32
    %c0_i32_0 = arith.constant 0 : i32
    %c0_i32_1 = arith.constant 0 : i32
    %c0_i32_2 = arith.constant 0 : i32
    return %c0_i32, %c0_i32_0, %c0_i32_1 : i32, i32, i32
  }
  func.func @transform_5(%arg0: i32) -> (i32, i32) {
    %c0_i32 = arith.constant 0 : i32
    %c0_i32_0 = arith.constant 0 : i32
    return %arg0, %c0_i32 : i32, i32
  }
}

</mosaic_0001>

<bundles_post_ra>
// kernel: tpu_custom_call.1
= control target key start
LH: loop header
LB: loop body
LE: loop exit
PB: predicated region body
PF: predicated region fallthrough
CT: control target
= control target key end

     0   :  { %10 = vsyncpa [#allocation3], 0  ;;  %s953_s18 = smov [#allocation2]   ;;  %s1032_s0 = inlined_call_operand.vmem [shape: f32[16,8], index: 0, kind: input, shape index: {}]   ;;  %s1033_s1 = inlined_call_operand.vmem [shape: f32[8,64], index: 1, kind: input, shape index: {}]   ;;  %s1034_s2 = inlined_call_operand.vmem [shape: f32[1,64], index: 2, kind: input, shape index: {}]   ;;  %s1035_s3 = inlined_call_operand.hbm [shape: f32[5,64,64], index: 3, kind: input, shape index: {}]   ;;  %s1036_s4 = inlined_call_operand.vmem [shape: f32[5,1,64], index: 4, kind: input, shape index: {}]   ;;  %s1037_s5 = inlined_call_operand.vmem [shape: f32[16,1], index: 5, kind: output, shape index: {}]  }
   0x1   :  { %s22_s19 = sshll.u32 %s953_s18, 4  ;;  %s23_s19 = int_to_ptr.vmem [resolvable:$true] %s22_s19 }
   0x2   :  { %s939_s20 = scalar_lea.vmem %s23_s19, 5120  ;;  %p944_p1 = scmp.lt.s32.totalorder %s23_s19, %s23_s19 }
   0x3   :  { %p940_p0 = scmp.ne.s32.totalorder %s23_s19, %s939_s20  ;;  %p945_p2 = scmp.lt.s32.totalorder %s939_s20, %s939_s20 }
   0x5   :  { %p946_p3 = por %p945_p2, %p944_p1 }
   0x7   :  { %p947_p4 = pnand %p946_p3, %p940_p0 }
   0x9   :  { %950 = shalt.err (!%p947_p4)
}
   0xa   :  { %s954_s21 = smov 128   ;;  %s955_s22 = smov 8  }
   0xb   :  { %28 = dma.hbm_to_vmem [thread:$0]  %s1035_s3, 5120, %s23_s19, [#allocation3], %s954_s21, %s954_s21, %s955_s22  }
   0xc   :  { %951 = dma.done.wait [#allocation3], 5120  }
   0xd   :  { %952 = vsyncadd [#allocation3], 4294962176  ;;  %vm44_vm0 = vcmask 64512   ;;  %v36_v0 = vld [vmem:[%s1033_s1] sm:$0xff]  ;;  %v35_v2 = vld [vmem:[%s1032_s0 + $0x8] sm:$0xff]  ;;  %vm159_vm1 = vcmask 523264  }
   0xe   :  { %v34_v1 = vld [vmem:[%s1032_s0] sm:$0xff]  ;;  %788 = vmatprep.subr.mxu0 %v36_v0  ;;  %v151_v3 = vld [vmem:[#allocation2 + $0x38] sm:$0xff]  ;;  %v150_v4 = vld [vmem:[#allocation2 + $0x30] sm:$0xff]  ;;  %vm705_vm2 = vcmask 7168  }
   0xf   :  { %790 = vmatprep.mubr.msk.f32.mxu0 %vm44_vm0, %v34_v1  ;;  %789 = vmatpush3.msra.mxu0 %v36_v0  ;;  %v149_v5 = vld [vmem:[#allocation2 + $0x28] sm:$0xff]  ;;  %v148_v6 = vld [vmem:[#allocation2 + $0x20] sm:$0xff]  ;;  %v147_v7 = vld [vmem:[#allocation2 + $0x18] sm:$0xff] }
  0x10   :  { %791 = vmatmul.mubr.msk.f32.vlgmr.msra.gmra.mxu0 %vm44_vm0, %v35_v2  ;;  %793 = vmatprep.subr.mxu1 %v151_v3  ;;  %v146_v8 = vld [vmem:[#allocation2 + $0x10] sm:$0xff]  ;;  %v145_v9 = vld [vmem:[#allocation2 + $0x8] sm:$0xff]  ;;  %v144_v10 = vld [vmem:[#allocation2] sm:$0xff] }
  0x11   :  { %794 = vmatpush3.msra.mxu1 %v151_v3  ;;  %v713_v11 = vld [vmem:[%s1034_s2] ss:$0 sm:$0xff]  ;;  %v267_v34 = vld [vmem:[#allocation2 + $0x78] sm:$0xff]  ;;  %v266_v35 = vld [vmem:[#allocation2 + $0x70] sm:$0xff] }
  0x12   :  { %795 = vmatprep.subr.mxu1 %v150_v4  ;;  %812 = vmatprep.subr.mxu0 %v267_v34  ;;  %v265_v36 = vld [vmem:[#allocation2 + $0x68] sm:$0xff]  ;;  %v264_v37 = vld [vmem:[#allocation2 + $0x60] sm:$0xff]  ;;  %v263_v38 = vld [vmem:[#allocation2 + $0x58] sm:$0xff] }
  0x13   :  { %796 = vmatpush3.msra.mxu1 %v150_v4  ;;  %813 = vmatpush3.msra.mxu0 %v267_v34  ;;  %v262_v39 = vld [vmem:[#allocation2 + $0x50] sm:$0xff]  ;;  %v261_v40 = vld [vmem:[#allocation2 + $0x48] sm:$0xff]  ;;  %v260_v41 = vld [vmem:[#allocation2 + $0x40] sm:$0xff] }
  0x14   :  { %797 = vmatprep.subr.mxu1 %v149_v5  ;;  %814 = vmatprep.subr.mxu0 %v266_v35  ;;  %v716_v42 = vld [vmem:[%s1036_s4] ss:$0 sm:$0xff]  ;;  %v383_v1 = vld [vmem:[#allocation2 + $0xb8] sm:$0xff]  ;;  %v382_v2 = vld [vmem:[#allocation2 + $0xb0] sm:$0xff] }
  0x15   :  { %798 = vmatpush3.msra.mxu1 %v149_v5  ;;  %815 = vmatpush3.msra.mxu0 %v266_v35  ;;  %v381_v3 = vld [vmem:[#allocation2 + $0xa8] sm:$0xff]  ;;  %v380_v4 = vld [vmem:[#allocation2 + $0xa0] sm:$0xff]  ;;  %v379_v5 = vld [vmem:[#allocation2 + $0x98] sm:$0xff] }
  0x16   :  { %799 = vmatprep.subr.mxu1 %v148_v6  ;;  %816 = vmatprep.subr.mxu0 %v265_v36  ;;  %v497_v34 = vld [vmem:[#allocation2 + $0xe8] sm:$0xff]  ;;  %v496_v35 = vld [vmem:[#allocation2 + $0xe0] sm:$0xff] }
  0x17   :  { %800 = vmatpush3.msra.mxu1 %v148_v6  ;;  %817 = vmatpush3.msra.mxu0 %v265_v36  ;;  %v378_v6 = vld [vmem:[#allocation2 + $0x90] sm:$0xff]  ;;  %v495_v36 = vld [vmem:[#allocation2 + $0xd8] sm:$0xff] }
  0x18   :  { %801 = vmatprep.subr.mxu1 %v147_v7  ;;  %818 = vmatprep.subr.mxu0 %v264_v37 }
  0x19   :  { %802 = vmatpush3.msra.mxu1 %v147_v7  ;;  %819 = vmatpush3.msra.mxu0 %v264_v37  ;;  %v377_v7 = vld [vmem:[#allocation2 + $0x88] sm:$0xff]  ;;  %v494_v37 = vld [vmem:[#allocation2 + $0xd0] sm:$0xff] }
  0x1a   :  { %803 = vmatprep.subr.mxu1 %v146_v8  ;;  %820 = vmatprep.subr.mxu0 %v263_v38 }
  0x1b   :  { %804 = vmatpush3.msra.mxu1 %v146_v8  ;;  %821 = vmatpush3.msra.mxu0 %v263_v38  ;;  %v376_v8 = vld [vmem:[#allocation2 + $0x80] sm:$0xff]  ;;  %v493_v38 = vld [vmem:[#allocation2 + $0xc8] sm:$0xff] }
  0x1c   :  { %805 = vmatprep.subr.mxu1 %v145_v9  ;;  %822 = vmatprep.subr.mxu0 %v262_v39 }
  0x1d   :  { %806 = vmatpush3.msra.mxu1 %v145_v9  ;;  %823 = vmatpush3.msra.mxu0 %v262_v39  ;;  %v720_v9 = vld [vmem:[%s1036_s4 + $0x1] ss:$0 sm:$0xff] }
  0x1e   :  { %807 = vmatprep.subr.mxu1 %v144_v10  ;;  %824 = vmatprep.subr.mxu0 %v261_v40  ;;  %v492_v39 = vld [vmem:[#allocation2 + $0xc0] sm:$0xff] }
  0x1f   :  { %808 = vmatpush3.msra.mxu1 %v144_v10  ;;  %825 = vmatpush3.msra.mxu0 %v261_v40  ;;  %v724_v40 = vld [vmem:[%s1036_s4 + $0x2] ss:$0 sm:$0xff] }
  0x20   :  { %826 = vmatprep.subr.mxu0 %v260_v41  ;;  %831 = vmatprep.subr.mxu1 %v383_v1 }
  0x21   :  { %827 = vmatpush3.msra.mxu0 %v260_v41 }
  0xd0   :  { %v792_v12 = vpop.f32.mrf.mxu0 }
  0xd1   :  { %v123_v13 = vadd.f32 %v792_v12, %v713_v11 }
  0xd2   :  { %v117_v14 = vpop.f32.mrf.mxu0 }
  0xd3   :  { %v127_v15 = vmin.f32 %v123_v13, 20.0  ;;  %v118_v16 = vadd.f32 %v713_v11, %v117_v14 }
  0xd5   :  { %v130_v17 = vmul.f32 1.442695, %v127_v15  ;;  %v126_v18 = vmin.f32 %v118_v16, 20.0 }
  0xd7   :  { %891 = vpow2.f32 %v130_v17  ;;  %v128_v19 = vmul.f32 1.442695, %v126_v18 }
  0xd9   :  { %893 = vpow2.f32 %v128_v19 }
  0xe4   :  { %v892_v20 = vpop.eup %891 }
  0xe5   :  { %v133_v21 = vadd.f32 2.0, %v892_v20 }
  0xe6   :  { %v894_v22 = vpop.eup %893 }
  0xe7   :  { %v135_v23 = vmul.f32 %v892_v20, %v133_v21  ;;  %v132_v24 = vadd.f32 2.0, %v894_v22 }
  0xe9   :  { %v139_v25 = vadd.f32 2.0, %v135_v23  ;;  %v134_v26 = vmul.f32 %v894_v22, %v132_v24  ;;  %v137_v31 = vmul.f32 %v135_v23, %v123_v13 }
  0xeb   :  { %v138_v27 = vadd.f32 2.0, %v134_v26  ;;  %895 = vrcp.f32 %v139_v25  ;;  %v136_v29 = vmul.f32 %v134_v26, %v118_v16 }
  0xed   :  { %897 = vrcp.f32 %v138_v27 }
  0xf8   :  { %v896_v28 = vpop.eup %895 }
  0xf9   :  { %v143_v33 = vmul.f32 %v896_v28, %v137_v31 }
  0xfa   :  { %v898_v30 = vpop.eup %897 }
  0xfb   :  { %v142_v32 = vmul.f32 %v898_v30, %v136_v29 }
  0xfd   :  { %809 = vmatprep.mubr.msk.f32.mxu1 %vm159_vm1, %v142_v32  ;;  %v499_v32 = vld [vmem:[#allocation2 + $0xf8] sm:$0xff] }
  0xfe   :  { %810 = vmatmul.mubr.msk.f32.vlgmr.msra.gmra.mxu1 %vm159_vm1, %v143_v33  ;;  %850 = vmatprep.subr.mxu0 %v499_v32  ;;  %v498_v33 = vld [vmem:[#allocation2 + $0xf0] sm:$0xff] }
  0xff   :  { %832 = vmatpush3.msra.mxu1 %v383_v1  ;;  %v613_v1 = vld [vmem:[#allocation2 + $0x128] sm:$0xff] }
 0x100   :  { %833 = vmatprep.subr.mxu1 %v382_v2 }
 0x101   :  { %834 = vmatpush3.msra.mxu1 %v382_v2  ;;  %v612_v2 = vld [vmem:[#allocation2 + $0x120] sm:$0xff] }
 0x102   :  { %835 = vmatprep.subr.mxu1 %v381_v3 }
 0x103   :  { %836 = vmatpush3.msra.mxu1 %v381_v3  ;;  %v611_v3 = vld [vmem:[#allocation2 + $0x118] sm:$0xff] }
 0x104   :  { %837 = vmatprep.subr.mxu1 %v380_v4 }
 0x105   :  { %838 = vmatpush3.msra.mxu1 %v380_v4  ;;  %v610_v4 = vld [vmem:[#allocation2 + $0x110] sm:$0xff] }
 0x106   :  { %839 = vmatprep.subr.mxu1 %v379_v5 }
 0x107   :  { %840 = vmatpush3.msra.mxu1 %v379_v5  ;;  %v609_v5 = vld [vmem:[#allocation2 + $0x108] sm:$0xff] }
 0x108   :  { %841 = vmatprep.subr.mxu1 %v378_v6 }
 0x109   :  { %842 = vmatpush3.msra.mxu1 %v378_v6  ;;  %v608_v6 = vld [vmem:[#allocation2 + $0x100] sm:$0xff] }
 0x10a   :  { %843 = vmatprep.subr.mxu1 %v377_v7 }
 0x10b   :  { %844 = vmatpush3.msra.mxu1 %v377_v7  ;;  %v728_v7 = vld [vmem:[%s1036_s4 + $0x3] ss:$0 sm:$0xff] }
 0x10c   :  { %845 = vmatprep.subr.mxu1 %v376_v8 }
 0x10d   :  { %846 = vmatpush3.msra.mxu1 %v376_v8 }
 0x1be   :  { %v811_v43 = vpop.f32.mrf.mxu1 }
 0x1bf   :  { %v238_v44 = vadd.f32 %v811_v43, %v716_v42 }
 0x1c0   :  { %v232_v45 = vpop.f32.mrf.mxu1 }
 0x1c1   :  { %v242_v46 = vmin.f32 %v238_v44, 20.0  ;;  %v233_v47 = vadd.f32 %v716_v42, %v232_v45 }
 0x1c3   :  { %v245_v48 = vmul.f32 1.442695, %v242_v46  ;;  %v241_v49 = vmin.f32 %v233_v47, 20.0 }
 0x1c5   :  { %899 = vpow2.f32 %v245_v48  ;;  %v243_v50 = vmul.f32 1.442695, %v241_v49 }
 0x1c7   :  { %901 = vpow2.f32 %v243_v50 }
 0x1d2   :  { %v900_v51 = vpop.eup %899 }
 0x1d3   :  { %v248_v52 = vadd.f32 2.0, %v900_v51 }
 0x1d4   :  { %v902_v53 = vpop.eup %901 }
 0x1d5   :  { %v250_v54 = vmul.f32 %v900_v51, %v248_v52  ;;  %v247_v55 = vadd.f32 2.0, %v902_v53 }
 0x1d7   :  { %v254_v56 = vadd.f32 2.0, %v250_v54  ;;  %v249_v57 = vmul.f32 %v902_v53, %v247_v55  ;;  %v252_v62 = vmul.f32 %v250_v54, %v238_v44 }
 0x1d9   :  { %v253_v58 = vadd.f32 2.0, %v249_v57  ;;  %903 = vrcp.f32 %v254_v56  ;;  %v251_v60 = vmul.f32 %v249_v57, %v233_v47 }
 0x1db   :  { %905 = vrcp.f32 %v253_v58 }
 0x1e6   :  { %v904_v59 = vpop.eup %903 }
 0x1e7   :  { %v258_v0 = vmul.f32 %v904_v59, %v252_v62 }
 0x1e8   :  { %v906_v61 = vpop.eup %905 }
 0x1e9   :  { %v257_v63 = vmul.f32 %v906_v61, %v251_v60 }
 0x1eb   :  { %828 = vmatprep.mubr.msk.f32.mxu0 %vm159_vm1, %v257_v63  ;;  %v615_v63 = vld [vmem:[#allocation2 + $0x138] sm:$0xff] }
 0x1ec   :  { %829 = vmatmul.mubr.msk.f32.vlgmr.msra.gmra.mxu0 %vm159_vm1, %v258_v0  ;;  %869 = vmatprep.subr.mxu1 %v615_v63  ;;  %v614_v0 = vld [vmem:[#allocation2 + $0x130] sm:$0xff] }
 0x1ed   :  { %851 = vmatpush3.msra.mxu0 %v499_v32 }
 0x1ee   :  { %852 = vmatprep.subr.mxu0 %v498_v33 }
 0x1ef   :  { %853 = vmatpush3.msra.mxu0 %v498_v33 }
 0x1f0   :  { %854 = vmatprep.subr.mxu0 %v497_v34 }
 0x1f1   :  { %855 = vmatpush3.msra.mxu0 %v497_v34 }
 0x1f2   :  { %856 = vmatprep.subr.mxu0 %v496_v35 }
 0x1f3   :  { %857 = vmatpush3.msra.mxu0 %v496_v35 }
 0x1f4   :  { %858 = vmatprep.subr.mxu0 %v495_v36 }
 0x1f5   :  { %859 = vmatpush3.msra.mxu0 %v495_v36 }
 0x1f6   :  { %860 = vmatprep.subr.mxu0 %v494_v37 }
 0x1f7   :  { %861 = vmatpush3.msra.mxu0 %v494_v37 }
 0x1f8   :  { %862 = vmatprep.subr.mxu0 %v493_v38 }
 0x1f9   :  { %863 = vmatpush3.msra.mxu0 %v493_v38 }
 0x1fa   :  { %864 = vmatprep.subr.mxu0 %v492_v39 }
 0x1fb   :  { %865 = vmatpush3.msra.mxu0 %v492_v39 }
 0x2ac   :  { %v830_v10 = vpop.f32.mrf.mxu0 }
 0x2ad   :  { %v354_v11 = vadd.f32 %v830_v10, %v720_v9 }
 0x2ae   :  { %v348_v12 = vpop.f32.mrf.mxu0 }
 0x2af   :  { %v358_v13 = vmin.f32 %v354_v11, 20.0  ;;  %v349_v14 = vadd.f32 %v720_v9, %v348_v12 }
 0x2b1   :  { %v361_v15 = vmul.f32 1.442695, %v358_v13  ;;  %v357_v16 = vmin.f32 %v349_v14, 20.0 }
 0x2b3   :  { %907 = vpow2.f32 %v361_v15  ;;  %v359_v17 = vmul.f32 1.442695, %v357_v16 }
 0x2b5   :  { %909 = vpow2.f32 %v359_v17 }
 0x2c0   :  { %v908_v18 = vpop.eup %907 }
 0x2c1   :  { %v364_v19 = vadd.f32 2.0, %v908_v18 }
 0x2c2   :  { %v910_v20 = vpop.eup %909 }
 0x2c3   :  { %v366_v21 = vmul.f32 %v908_v18, %v364_v19  ;;  %v363_v22 = vadd.f32 2.0, %v910_v20 }
 0x2c5   :  { %v370_v23 = vadd.f32 2.0, %v366_v21  ;;  %v365_v24 = vmul.f32 %v910_v20, %v363_v22  ;;  %v368_v29 = vmul.f32 %v366_v21, %v354_v11 }
 0x2c7   :  { %v369_v25 = vadd.f32 2.0, %v365_v24  ;;  %911 = vrcp.f32 %v370_v23  ;;  %v367_v27 = vmul.f32 %v365_v24, %v349_v14 }
 0x2c9   :  { %913 = vrcp.f32 %v369_v25 }
 0x2d4   :  { %v912_v26 = vpop.eup %911 }
 0x2d5   :  { %v374_v31 = vmul.f32 %v912_v26, %v368_v29 }
 0x2d6   :  { %v914_v28 = vpop.eup %913 }
 0x2d7   :  { %v373_v30 = vmul.f32 %v914_v28, %v367_v27 }
 0x2d9   :  { %847 = vmatprep.mubr.msk.f32.mxu1 %vm159_vm1, %v373_v30  ;;  %v732_v30 = vld [vmem:[%s1036_s4 + $0x4] ss:$0 sm:$0xff] }
 0x2da   :  { %848 = vmatmul.mubr.msk.f32.vlgmr.msra.gmra.mxu1 %vm159_vm1, %v374_v31 }
 0x2db   :  { %870 = vmatpush3.msra.mxu1 %v615_v63 }
 0x2dc   :  { %871 = vmatprep.subr.mxu1 %v614_v0 }
 0x2dd   :  { %872 = vmatpush3.msra.mxu1 %v614_v0 }
 0x2de   :  { %873 = vmatprep.subr.mxu1 %v613_v1 }
 0x2df   :  { %874 = vmatpush3.msra.mxu1 %v613_v1 }
 0x2e0   :  { %875 = vmatprep.subr.mxu1 %v612_v2 }
 0x2e1   :  { %876 = vmatpush3.msra.mxu1 %v612_v2 }
 0x2e2   :  { %877 = vmatprep.subr.mxu1 %v611_v3 }
 0x2e3   :  { %878 = vmatpush3.msra.mxu1 %v611_v3 }
 0x2e4   :  { %879 = vmatprep.subr.mxu1 %v610_v4 }
 0x2e5   :  { %880 = vmatpush3.msra.mxu1 %v610_v4 }
 0x2e6   :  { %881 = vmatprep.subr.mxu1 %v609_v5 }
 0x2e7   :  { %882 = vmatpush3.msra.mxu1 %v609_v5 }
 0x2e8   :  { %883 = vmatprep.subr.mxu1 %v608_v6 }
 0x2e9   :  { %884 = vmatpush3.msra.mxu1 %v608_v6 }
 0x39a   :  { %v849_v41 = vpop.f32.mrf.mxu1 }
 0x39b   :  { %v470_v42 = vadd.f32 %v849_v41, %v724_v40 }
 0x39c   :  { %v464_v43 = vpop.f32.mrf.mxu1 }
 0x39d   :  { %v474_v44 = vmin.f32 %v470_v42, 20.0  ;;  %v465_v45 = vadd.f32 %v724_v40, %v464_v43 }
 0x39f   :  { %v477_v46 = vmul.f32 1.442695, %v474_v44  ;;  %v473_v47 = vmin.f32 %v465_v45, 20.0 }
 0x3a1   :  { %915 = vpow2.f32 %v477_v46  ;;  %v475_v48 = vmul.f32 1.442695, %v473_v47 }
 0x3a3   :  { %917 = vpow2.f32 %v475_v48 }
 0x3ae   :  { %v916_v49 = vpop.eup %915 }
 0x3af   :  { %v480_v50 = vadd.f32 2.0, %v916_v49 }
 0x3b0   :  { %v918_v51 = vpop.eup %917 }
 0x3b1   :  { %v482_v52 = vmul.f32 %v916_v49, %v480_v50  ;;  %v479_v53 = vadd.f32 2.0, %v918_v51 }
 0x3b3   :  { %v486_v54 = vadd.f32 2.0, %v482_v52  ;;  %v481_v55 = vmul.f32 %v918_v51, %v479_v53  ;;  %v484_v60 = vmul.f32 %v482_v52, %v470_v42 }
 0x3b5   :  { %v485_v56 = vadd.f32 2.0, %v481_v55  ;;  %919 = vrcp.f32 %v486_v54  ;;  %v483_v58 = vmul.f32 %v481_v55, %v465_v45 }
 0x3b7   :  { %921 = vrcp.f32 %v485_v56 }
 0x3c2   :  { %v920_v57 = vpop.eup %919 }
 0x3c3   :  { %v490_v62 = vmul.f32 %v920_v57, %v484_v60 }
 0x3c4   :  { %v922_v59 = vpop.eup %921 }
 0x3c5   :  { %v489_v61 = vmul.f32 %v922_v59, %v483_v58 }
 0x3c7   :  { %866 = vmatprep.mubr.msk.f32.mxu0 %vm159_vm1, %v489_v61 }
 0x3c8   :  { %867 = vmatmul.mubr.msk.f32.vlgmr.msra.gmra.mxu0 %vm159_vm1, %v490_v62 }
 0x488   :  { %v868_v8 = vpop.f32.mrf.mxu0 }
 0x489   :  { %v586_v9 = vadd.f32 %v868_v8, %v728_v7 }
 0x48a   :  { %v580_v10 = vpop.f32.mrf.mxu0 }
 0x48b   :  { %v590_v11 = vmin.f32 %v586_v9, 20.0  ;;  %v581_v12 = vadd.f32 %v728_v7, %v580_v10 }
 0x48d   :  { %v593_v13 = vmul.f32 1.442695, %v590_v11  ;;  %v589_v14 = vmin.f32 %v581_v12, 20.0 }
 0x48f   :  { %923 = vpow2.f32 %v593_v13  ;;  %v591_v15 = vmul.f32 1.442695, %v589_v14 }
 0x491   :  { %925 = vpow2.f32 %v591_v15 }
 0x49c   :  { %v924_v16 = vpop.eup %923 }
 0x49d   :  { %v596_v17 = vadd.f32 2.0, %v924_v16 }
 0x49e   :  { %v926_v18 = vpop.eup %925 }
 0x49f   :  { %v598_v19 = vmul.f32 %v924_v16, %v596_v17  ;;  %v595_v20 = vadd.f32 2.0, %v926_v18 }
 0x4a1   :  { %v602_v21 = vadd.f32 2.0, %v598_v19  ;;  %v597_v22 = vmul.f32 %v926_v18, %v595_v20  ;;  %v600_v27 = vmul.f32 %v598_v19, %v586_v9 }
 0x4a3   :  { %v601_v23 = vadd.f32 2.0, %v597_v22  ;;  %927 = vrcp.f32 %v602_v21  ;;  %v599_v25 = vmul.f32 %v597_v22, %v581_v12 }
 0x4a5   :  { %929 = vrcp.f32 %v601_v23 }
 0x4b0   :  { %v928_v24 = vpop.eup %927 }
 0x4b1   :  { %v606_v29 = vmul.f32 %v928_v24, %v600_v27 }
 0x4b2   :  { %v930_v26 = vpop.eup %929 }
 0x4b3   :  { %v605_v28 = vmul.f32 %v930_v26, %v599_v25 }
 0x4b5   :  { %885 = vmatprep.mubr.msk.f32.mxu1 %vm159_vm1, %v605_v28 }
 0x4b6   :  { %886 = vmatmul.mubr.msk.f32.vlgmr.msra.gmra.mxu1 %vm159_vm1, %v606_v29 }
 0x576   :  { %v887_v31 = vpop.f32.mrf.mxu1 }
 0x577   :  { %v702_v32 = vadd.f32 %v887_v31, %v732_v30 }
 0x578   :  { %v696_v33 = vpop.f32.mrf.mxu1 }
 0x579   :  { %707 = vst.msk [vmem:[%s1037_s5 + $0x8] sm:$0xff] %vm705_vm2, %v702_v32  ;;  %v697_v34 = vadd.f32 %v732_v30, %v696_v33 }
 0x57b   :  { %706 = vst.msk [vmem:[%s1037_s5] sm:$0xff] %vm705_vm2, %v697_v34 }
 0x57c   :  { %712 = vsyncpa [#allocation3], 1 }

</bundles_post_ra>
